<compile_context>
chip_gen: v5e
topology: v5e:2x2
jax: 0.10.0
libtpu: 0.0.40
codegen_flags: <defaults>
</compile_context>

<pallas_src>
import jax
import jax.numpy as jnp
from jax.experimental import pallas as pl
from jax.experimental.pallas import tpu as pltpu


# ----------------------------------------------------------------------------
# Pallas kernel: one batch tile of the folded wide+deep MLP (3 dots total).
# ----------------------------------------------------------------------------
def _make_wd_kernel(h1, h2):
    """h1 / h2 are the deep hidden widths; lane h1 (resp. h2) of the layer-1
    (resp. layer-2) activation carries the wide branch + folded constants and
    must bypass ReLU."""

    def kernel(
        x_ref,    # (TB, D)        bf16   concat(emb, dense)
        w1_ref,   # (D, H1+1)      bf16   BN0-folded W1 | wide column
        b1_ref,   # (1, H1+1)      f32    b1 + t0@W1 | bp + t2@Wp_deep + bw*wp_w
        w2_ref,   # (H1+1, H2+1)   bf16   BN1-folded W2, carried-lane identity
        b2_ref,   # (1, H2+1)      f32    b2 + t1@W2 | 0
        wp_ref,   # (H2+1, 1)      bf16   BN2-folded Wp_deep | 1
        out_ref,  # (TB, 1)        f32
    ):
        x = x_ref[...]

        # Layer 1 (+ wide column + all folded constants), f32 accumulation.
        a = jnp.dot(x, w1_ref[...], preferred_element_type=jnp.float32)
        a = a + b1_ref[...]
        lane_a = jax.lax.broadcasted_iota(jnp.int32, a.shape, 1)
        a = jnp.where(lane_a < h1, jnp.maximum(a, 0.0), a)   # ReLU, skip lane h1

        # Layer 2; carried lane passes through via the identity row/column.
        b = jnp.dot(a.astype(w2_ref.dtype), w2_ref[...],
                    preferred_element_type=jnp.float32)
        b = b + b2_ref[...]
        lane_b = jax.lax.broadcasted_iota(jnp.int32, b.shape, 1)
        b = jnp.where(lane_b < h2, jnp.maximum(b, 0.0), b)   # ReLU, skip lane h2

        # Predict: deep dot + carried wide/const lane (x1.0) in a single dot.
        logit = jnp.dot(b.astype(wp_ref.dtype), wp_ref[...],
                        preferred_element_type=jnp.float32)
        out_ref[...] = jax.nn.sigmoid(logit)

    return kernel


def _round_up(x, m):
    return ((x + m - 1) // m) * m


def _cdiv(a, b):
    return -(-a // b)


def wide_and_deep_forward(emb, dense, fp, *, block_batch=2048):
    """emb: (B, E) bf16/f32, dense: (B, Dd), fp: folded params. -> (B, 1) f32."""
    B = emb.shape[0]

    # Concat + cast in one glue expression (bf16 before any padding).
    x = jnp.concatenate(
        [emb.astype(jnp.bfloat16), dense.astype(jnp.bfloat16)], axis=1)
    D = x.shape[1]
    h1 = fp["b1"].shape[1] - 1
    h2 = fp["b2"].shape[1] - 1

    # Batch tile: multiple of 16 (bf16 sublane packing); keep >=2 grid steps
    # whenever B allows so both v7x TensorCores get work; pad B to a tile
    # multiple (padded rows produce garbage logits that are sliced off).
    tb = min(block_batch, _round_up(max(_cdiv(B, 2), 1), 16))
    b_pad = _round_up(B, tb)
    if b_pad != B:
        x = jnp.pad(x, ((0, b_pad - B), (0, 0)))

    weights = (fp["w1"], fp["b1"], fp["w2"], fp["b2"], fp["wp"])

    def const_spec(a):
        # Whole (small) weight stays VMEM-resident across all grid steps.
        return pl.BlockSpec(a.shape, lambda i: (0, 0))

    out = pl.pallas_call(
        _make_wd_kernel(h1, h2),
        grid=(b_pad // tb,),
        in_specs=[pl.BlockSpec((tb, D), lambda i: (i, 0))]
                 + [const_spec(w) for w in weights],
        out_specs=pl.BlockSpec((tb, 1), lambda i: (i, 0)),
        out_shape=jax.ShapeDtypeStruct((b_pad, 1), jnp.float32),
        compiler_params=pltpu.CompilerParams(
            dimension_semantics=("parallel",)),
    )(x, *weights)
    return out[:B]


# ----------------------------------------------------------------------------
# Parameter construction (deterministic, in-script), folding, JAX glue.
# ----------------------------------------------------------------------------
def make_raw_params(key, sparse_dim_dict, emb_dim, dense_dim, hidden_dims):
    n_sparse = len(sparse_dim_dict)
    emb_width = n_sparse * emb_dim
    d_in = emb_width + dense_dim
    h1, h2 = hidden_dims

    keys = iter(jax.random.split(key, 32))

    def rand(shape, scale=0.1):
        return scale * jax.random.normal(next(keys), shape, dtype=jnp.float32)

    raw = {}
    raw["emb_tables"] = {
        name: rand((dim, emb_dim), scale=1.0)
        for name, dim in sparse_dim_dict.items()
    }
    raw["ww"] = rand((emb_width, 1))
    raw["bw"] = rand((1, 1))
    raw["w1"] = rand((d_in, h1))
    raw["b1"] = rand((1, h1))
    raw["w2"] = rand((h1, h2))
    raw["b2"] = rand((1, h2))
    wp = rand((h2 + 1, 1))
    raw["wp_wide"] = wp[:1, :]          # (1, 1)
    raw["wp_deep"] = wp[1:, :]          # (h2, 1)
    raw["bp"] = rand((1, 1))

    # BatchNorm1d (eval mode) as per-feature scale/shift: y = x * s + t
    eps = 1e-5

    def folded_bn(dim):
        gamma = 1.0 + rand((1, dim), scale=0.05)
        beta = rand((1, dim), scale=0.05)
        mean = rand((1, dim), scale=0.05)
        var = jnp.abs(1.0 + rand((1, dim), scale=0.05))
        s = gamma / jnp.sqrt(var + eps)
        t = beta - mean * s
        return s, t

    raw["s0"], raw["t0"] = folded_bn(d_in)
    raw["s1"], raw["t1"] = folded_bn(h1)
    raw["s2"], raw["t2"] = folded_bn(h2)
    return raw, emb_width


def fold_params(raw, emb_width):
    """Fold BN affines + wide/predict scalars into the linears (eval-exact),
    and pack the wide branch + all constants into an extra carried column."""
    e = emb_width
    d_in, h1 = raw["w1"].shape
    h2 = raw["w2"].shape[1]

    # BN0 -> layer 1
    w1f = raw["w1"] * raw["s0"].T
    b1f = raw["b1"] + raw["t0"] @ raw["w1"]
    # BN1 -> layer 2
    w2f = raw["w2"] * raw["s1"].T
    b2f = raw["b2"] + raw["t1"] @ raw["w2"]
    # BN2 -> predict (deep columns)
    wpf = raw["wp_deep"] * raw["s2"].T
    # wide branch scaled by predict-wide scalar; all scalar constants.
    ww_fold = raw["ww"] * raw["wp_wide"]                       # (E, 1)
    const = raw["bp"] + raw["t2"] @ raw["wp_deep"] + raw["bw"] * raw["wp_wide"]

    # Layer 1 augmented: extra column = wide weight (zeros for dense rows);
    # its bias carries every folded constant.
    wide_col = jnp.concatenate(
        [ww_fold, jnp.zeros((d_in - e, 1), jnp.float32)], axis=0)
    w1aug = jnp.concatenate([w1f, wide_col], axis=1)           # (D, h1+1)
    b1aug = jnp.concatenate([b1f, const], axis=1)              # (1, h1+1)

    # Layer 2 augmented: identity pass-through for the carried lane.
    w2aug = jnp.zeros((h1 + 1, h2 + 1), jnp.float32)
    w2aug = w2aug.at[:h1, :h2].set(w2f)
    w2aug = w2aug.at[h1, h2].set(1.0)
    b2aug = jnp.concatenate([b2f, jnp.zeros((1, 1), jnp.float32)], axis=1)

    # Predict augmented: carried lane is added straight into the logit.
    wp_aug = jnp.concatenate([wpf, jnp.ones((1, 1), jnp.float32)], axis=0)

    bf16 = jnp.bfloat16
    return {
        "w1": w1aug.astype(bf16),
        "b1": b1aug.astype(jnp.float32),
        "w2": w2aug.astype(bf16),
        "b2": b2aug.astype(jnp.float32),
        "wp": wp_aug.astype(bf16),
    }


def embed_sparse(sparse_feature, emb_tables, feature_names):
    """Gather + concat of per-feature embeddings (glue, plain JAX, bf16)."""
    embs = [emb_tables[name][sparse_feature[:, i]]
            for i, name in enumerate(feature_names)]
    return jnp.concatenate(embs, axis=1)


def reference_forward(emb, dense, raw):
    """Pure-JAX f32 reference using the *unfolded* parameters."""
    emb = emb.astype(jnp.float32)
    dense = dense.astype(jnp.float32)
    x = jnp.concatenate([emb, dense], axis=1)
    wide = emb @ raw["ww"] + raw["bw"]
    h = x * raw["s0"] + raw["t0"]
    h = jnp.maximum(h @ raw["w1"] + raw["b1"], 0.0)
    h = h * raw["s1"] + raw["t1"]
    h = jnp.maximum(h @ raw["w2"] + raw["b2"], 0.0)
    h = h * raw["s2"] + raw["t2"]
    logit = wide * raw["wp_wide"] + h @ raw["wp_deep"] + raw["bp"]
    return jax.nn.sigmoid(logit)


if __name__ == "__main__":
    # Small config consistent with the module's __init__.
    sparse_dim_dict = {"user_id": 11, "item_id": 23, "category": 7}
    emb_dim = 8
    dense_dim = 16
    hidden_dims = [16, 8]

    key = jax.random.PRNGKey(0)
    kp = jax.random.fold_in(key, 0)

    raw, emb_width = make_raw_params(kp, sparse_dim_dict, emb_dim,
                                     dense_dim, hidden_dims)
    fp = fold_params(raw, emb_width)

    feature_names = list(sparse_dim_dict.keys())
    maxes = jnp.array([sparse_dim_dict[n] for n in feature_names], jnp.int32)
    # Serve embedding tables in bf16 so the XLA gather emits bf16 directly.
    emb_tables_serving = {k: v.astype(jnp.bfloat16)
                          for k, v in raw["emb_tables"].items()}

    def run_case(batch, block_batch, case_id):
        ks, kd = jax.random.split(jax.random.fold_in(key, case_id), 2)
        sparse_feature = (
            jax.random.randint(ks, (batch, len(feature_names)), 0, 1 << 20)
            % maxes
        ).astype(jnp.int32)
        dense_feature = jax.random.normal(kd, (batch, dense_dim),
                                          dtype=jnp.float32)

        # glue: embedding gather + concat (per sparse feature), bf16
        emb = embed_sparse(sparse_feature, emb_tables_serving, feature_names)

        out = wide_and_deep_forward(emb, dense_feature, fp,
                                    block_batch=block_batch)
        out = jax.block_until_ready(out)

        ref = reference_forward(emb, dense_feature, raw)
        assert out.shape == (batch, 1)
        # bf16 matmul operands -> loosened tolerance vs the f32 reference.
        assert jnp.allclose(out, ref, atol=2e-2, rtol=2e-2), (batch, out, ref)

    # Case 1: tiny batch (single grid step).
    run_case(batch=8, block_batch=2048, case_id=1)
    # Case 2: batch > tile and not a tile multiple (multi-step grid + padding).
    run_case(batch=700, block_batch=256, case_id=2)

    print("KERNEL_OK")
</pallas_src>

<mosaic_0001>
module attributes {stable_mosaic.version = 11 : i64} {
  func.func @kernel(%arg0: i32, %arg1: memref<16x40xbf16, #tpu.memory_space<vmem>>, %arg2: memref<40x17xbf16, #tpu.memory_space<vmem>>, %arg3: memref<1x17xf32, #tpu.memory_space<vmem>>, %arg4: memref<17x9xbf16, #tpu.memory_space<vmem>>, %arg5: memref<1x9xf32, #tpu.memory_space<vmem>>, %arg6: memref<9x1xbf16, #tpu.memory_space<vmem>>, %arg7: memref<16x1xf32, #tpu.memory_space<vmem>>) attributes {dimension_semantics = [#tpu.dimension_semantics<parallel>], iteration_bounds = array<i64: 1>, scalar_prefetch = 0 : i64, scratch_operands = 0 : i64, tpu.core_type = #tpu.core_type<tc>, window_params = [{transform_indices = @transform_0, window_bounds = array<i64: 16, 40>}, {pipeline_mode = #tpu.pipeline_mode<synchronous>, transform_indices = @transform_1, window_bounds = array<i64: 40, 17>}, {pipeline_mode = #tpu.pipeline_mode<synchronous>, transform_indices = @transform_2, window_bounds = array<i64: 1, 17>}, {pipeline_mode = #tpu.pipeline_mode<synchronous>, transform_indices = @transform_3, window_bounds = array<i64: 17, 9>}, {pipeline_mode = #tpu.pipeline_mode<synchronous>, transform_indices = @transform_4, window_bounds = array<i64: 1, 9>}, {pipeline_mode = #tpu.pipeline_mode<synchronous>, transform_indices = @transform_5, window_bounds = array<i64: 9, 1>}, {transform_indices = @transform_6, window_bounds = array<i64: 16, 1>}]} {
    %c0 = arith.constant 0 : index
    %c0_0 = arith.constant 0 : index
    %0 = vector.load %arg1[%c0, %c0_0] : memref<16x40xbf16, #tpu.memory_space<vmem>>, vector<16x40xbf16>
    %c0_1 = arith.constant 0 : index
    %c0_2 = arith.constant 0 : index
    %1 = vector.load %arg2[%c0_1, %c0_2] : memref<40x17xbf16, #tpu.memory_space<vmem>>, vector<40x17xbf16>
    %cst = arith.constant dense<0.000000e+00> : vector<16x17xf32>
    %2 = tpu.matmul %0, %1, %cst {dimension_numbers = #tpu.dot_dimension_numbers<[1], [0], [0], [1], [0, 0, 1, 1], [], []>} : vector<16x40xbf16>, vector<40x17xbf16>, vector<16x17xf32> -> vector<16x17xf32>
    %c0_3 = arith.constant 0 : index
    %c0_4 = arith.constant 0 : index
    %3 = vector.load %arg3[%c0_3, %c0_4] : memref<1x17xf32, #tpu.memory_space<vmem>>, vector<1x17xf32>
    %4 = vector.broadcast %3 : vector<1x17xf32> to vector<16x17xf32>
    %5 = arith.addf %2, %4 : vector<16x17xf32>
    %6 = tpu.iota {dimensions = array<i32: 1>} : vector<16x17xi32>
    %c16_i32 = arith.constant 16 : i32
    %7 = vector.broadcast %c16_i32 : i32 to vector<16x17xi32>
    %8 = arith.cmpi slt, %6, %7 : vector<16x17xi32>
    %cst_5 = arith.constant 0.000000e+00 : f32
    %9 = vector.broadcast %cst_5 : f32 to vector<16x17xf32>
    %10 = arith.maximumf %5, %9 : vector<16x17xf32>
    %11 = arith.select %8, %10, %5 : vector<16x17xi1>, vector<16x17xf32>
    %12 = arith.truncf %11 : vector<16x17xf32> to vector<16x17xbf16>
    %c0_6 = arith.constant 0 : index
    %c0_7 = arith.constant 0 : index
    %13 = vector.load %arg4[%c0_6, %c0_7] : memref<17x9xbf16, #tpu.memory_space<vmem>>, vector<17x9xbf16>
    %cst_8 = arith.constant dense<0.000000e+00> : vector<16x9xf32>
    %14 = tpu.matmul %12, %13, %cst_8 {dimension_numbers = #tpu.dot_dimension_numbers<[1], [0], [0], [1], [0, 0, 1, 1], [], []>} : vector<16x17xbf16>, vector<17x9xbf16>, vector<16x9xf32> -> vector<16x9xf32>
    %c0_9 = arith.constant 0 : index
    %c0_10 = arith.constant 0 : index
    %15 = vector.load %arg5[%c0_9, %c0_10] : memref<1x9xf32, #tpu.memory_space<vmem>>, vector<1x9xf32>
    %16 = vector.broadcast %15 : vector<1x9xf32> to vector<16x9xf32>
    %17 = arith.addf %14, %16 : vector<16x9xf32>
    %18 = tpu.iota {dimensions = array<i32: 1>} : vector<16x9xi32>
    %c8_i32 = arith.constant 8 : i32
    %19 = vector.broadcast %c8_i32 : i32 to vector<16x9xi32>
    %20 = arith.cmpi slt, %18, %19 : vector<16x9xi32>
    %cst_11 = arith.constant 0.000000e+00 : f32
    %21 = vector.broadcast %cst_11 : f32 to vector<16x9xf32>
    %22 = arith.maximumf %17, %21 : vector<16x9xf32>
    %23 = arith.select %20, %22, %17 : vector<16x9xi1>, vector<16x9xf32>
    %24 = arith.truncf %23 : vector<16x9xf32> to vector<16x9xbf16>
    %c0_12 = arith.constant 0 : index
    %c0_13 = arith.constant 0 : index
    %25 = vector.load %arg6[%c0_12, %c0_13] : memref<9x1xbf16, #tpu.memory_space<vmem>>, vector<9x1xbf16>
    %cst_14 = arith.constant dense<0.000000e+00> : vector<16x1xf32>
    %26 = tpu.matmul %24, %25, %cst_14 {dimension_numbers = #tpu.dot_dimension_numbers<[1], [0], [0], [1], [0, 0, 1, 1], [], []>} : vector<16x9xbf16>, vector<9x1xbf16>, vector<16x1xf32> -> vector<16x1xf32>
    %27 = arith.negf %26 : vector<16x1xf32>
    %28 = math.exp %27 : vector<16x1xf32>
    %cst_15 = arith.constant 1.000000e+00 : f32
    %29 = vector.broadcast %cst_15 : f32 to vector<16x1xf32>
    %30 = arith.addf %29, %28 : vector<16x1xf32>
    %31 = arith.divf %29, %30 : vector<16x1xf32>
    %c0_16 = arith.constant 0 : index
    %c0_17 = arith.constant 0 : index
    %32 = vector.load %arg7[%c0_16, %c0_17] : memref<16x1xf32, #tpu.memory_space<vmem>>, vector<16x1xf32>
    tpu.vector_store %arg7[%c0_16, %c0_17], %31 {strides = array<i32>} : memref<16x1xf32, #tpu.memory_space<vmem>>, vector<16x1xf32>,
    return
  }
  func.func @transform_0(%arg0: i32) -> (i32, i32) {
    %c0_i32 = arith.constant 0 : i32
    %c0_i32_0 = arith.constant 0 : i32
    return %arg0, %c0_i32 : i32, i32
  }
  func.func @transform_1(%arg0: i32) -> (i32, i32) {
    %c0_i32 = arith.constant 0 : i32
    %c0_i32_0 = arith.constant 0 : i32
    %c0_i32_1 = arith.constant 0 : i32
    return %c0_i32, %c0_i32_0 : i32, i32
  }
  func.func @transform_2(%arg0: i32) -> (i32, i32) {
    %c0_i32 = arith.constant 0 : i32
    %c0_i32_0 = arith.constant 0 : i32
    %c0_i32_1 = arith.constant 0 : i32
    return %c0_i32, %c0_i32_0 : i32, i32
  }
  func.func @transform_3(%arg0: i32) -> (i32, i32) {
    %c0_i32 = arith.constant 0 : i32
    %c0_i32_0 = arith.constant 0 : i32
    %c0_i32_1 = arith.constant 0 : i32
    return %c0_i32, %c0_i32_0 : i32, i32
  }
  func.func @transform_4(%arg0: i32) -> (i32, i32) {
    %c0_i32 = arith.constant 0 : i32
    %c0_i32_0 = arith.constant 0 : i32
    %c0_i32_1 = arith.constant 0 : i32
    return %c0_i32, %c0_i32_0 : i32, i32
  }
  func.func @transform_5(%arg0: i32) -> (i32, i32) {
    %c0_i32 = arith.constant 0 : i32
    %c0_i32_0 = arith.constant 0 : i32
    %c0_i32_1 = arith.constant 0 : i32
    return %c0_i32, %c0_i32_0 : i32, i32
  }
  func.func @transform_6(%arg0: i32) -> (i32, i32) {
    %c0_i32 = arith.constant 0 : i32
    %c0_i32_0 = arith.constant 0 : i32
    return %arg0, %c0_i32 : i32, i32
  }
}

</mosaic_0001>

<bundles_post_ra>
// kernel: tpu_custom_call.1
= control target key start
LH: loop header
LB: loop body
LE: loop exit
PB: predicated region body
PF: predicated region fallthrough
CT: control target
= control target key end

     0   :  { %vm59_vm0 = vcmask 1043456   ;;  %vm55_vm1 = vcmask 326656   ;;  %vm105_vm2 = vcmask 1040384   ;;  %v249_v10 = vmov 0   ;;  %s326_s1 = inlined_call_operand.vmem [shape: bf16[40,17], index: 1, kind: input, shape index: {}]   ;;  %s327_s2 = inlined_call_operand.vmem [shape: f32[1,17], index: 2, kind: input, shape index: {}]   ;;  %s328_s0 = inlined_call_operand.vmem [shape: bf16[16,40], index: 0, kind: input, shape index: {}]   ;;  %s329_s4 = inlined_call_operand.vmem [shape: f32[1,9], index: 4, kind: input, shape index: {}]   ;;  %s330_s3 = inlined_call_operand.vmem [shape: bf16[17,9], index: 3, kind: input, shape index: {}]   ;;  %s331_s5 = inlined_call_operand.vmem [shape: bf16[9,1], index: 5, kind: input, shape index: {}]   ;;  %s332_s6 = inlined_call_operand.vmem [shape: f32[16,1], index: 6, kind: output, shape index: {}]  }
   0x1   :  { %v30_v0 = vld [vmem:[%s326_s1 + $0x10] sm:$0xf]  ;;  %v234_v4 = vld [vmem:[%s326_s1 + $0x8] sm:$0xff]  ;;  %v233_v5 = vld [vmem:[%s326_s1] sm:$0xff]  ;;  %v107_v11 = vsel %vm105_vm2, 65535, %v249_v10  ;;  %v77_v16 = vlaneseq  ;;  %vm101_vm4 = vcmask 138240  }
   0x2   :  { %v49_v1 = vunpack.c.l.b16 %v30_v0  ;;  %v232_v6 = vld [vmem:[%s328_s0] sm:$0xff]  ;;  %v87_v7 = vld [vmem:[%s330_s3 + $0x8] sm:$0x1]  ;;  %v250_v26 = vmov 65535   ;;  %vm142_vm5 = vcmask 1044480   ;;  %vm138_vm7 = vcmask 72704  }
   0x3   :  { %v97_v8 = vunpack.c.l.b16 %v87_v7  ;;  %v235_v13 = vld [vmem:[%s330_s3] sm:$0xff]  ;;  %v78_v18 = vand.u32 127, %v77_v16  ;;  %v143_v27 = vsel %vm59_vm0, 4294967295, %v250_v26  ;;  %vm200_vm11 = vcmask 7168  }
   0x4   :  { %v52_v2 = vpack.c.b16 %v49_v1, %v49_v1  ;;  %v239_v15 = vld [vmem:[%s327_s2] ss:$0 sm:$0xff]  ;;  %v236_v29 = vld [vmem:[%s331_s5] sm:$0x10]  ;;  %v144_v31 = vsel %vm142_vm5, %v143_v27, 0 }
   0x5   :  { %v99_v9 = vpack.c.b16 %v97_v8, %v97_v8  ;;  %vm79_vm3 = vcmp.lt.s32.totalorder %v78_v18, 16  ;;  %v227_v28 = vld [vmem:[%s331_s5] sm:$0xf]  ;;  %vm125_vm6 = vcmp.lt.s32.totalorder %v78_v18, 8 }
   0x6   :  { %v61_v3 = vsel %vm59_vm0, %v52_v2, 0  ;;  %v228_v30 = vor.u32 %v236_v29, %v227_v28  ;;  %v240_v34 = vld [vmem:[%s329_s4] ss:$0 sm:$0xff] }
   0x7   :  { %68 = vmatpush.bf16.msra.mxu0 %v61_v3  ;;  %v109_v12 = vand.u32 %v107_v11, %v99_v9 }
   0x8   :  { %v146_v32 = vand.u32 %v228_v30, %v144_v31 }
   0x9   :  { %117 = vmatpush.bf16.msra.mxu1 %v109_v12 }
   0xa   :  { %155 = vmatpush.bf16.msra.mxu2 %v146_v32 }
   0xb   :  { %69 = vmatpush.bf16.msra.mxu0 %v234_v4 }
   0xd   :  { %118 = vmatpush.bf16.msra.mxu1 %v235_v13 }
   0xf   :  { %70 = vmatpush.bf16.msra.mxu0 %v233_v5 }
  0x12   :  { %219 = vmatmul.msk.bf16.vlgmr.msra.gmra.mxu0 %vm55_vm1, %v232_v6 }
  0x8f   :  { %v72_v14 = vpop.f32.mrf.mxu0 }
  0x90   :  { %v73_v17 = vadd.f32 %v239_v15, %v72_v14 }
  0x92   :  { %v80_v20 = vmax.f32 %v73_v17, 0.0 }
  0x94   :  { %v82_v23 = vsel %vm79_vm3, %v80_v20, %v73_v17 }
  0x97   :  { %v74_v19 = vpop.f32.mrf.mxu0 }
  0x98   :  { %v75_v21 = vadd.f32 %v239_v15, %v74_v19 }
  0x9a   :  { %v81_v22 = vmax.f32 %v75_v21, 0.0 }
  0x9c   :  { %v83_v24 = vsel %vm79_vm3, %v81_v22, %v75_v21 }
  0x9d   :  { %v84_v25 = vpack.c.bf16 %v83_v24, %v82_v23 }
  0x9f   :  { %224 = vmatmul.msk.bf16.vlgmr.msra.gmra.mxu1 %vm101_vm4, %v84_v25 }
 0x11c   :  { %v120_v33 = vpop.f32.mrf.mxu1 }
 0x11d   :  { %v121_v35 = vadd.f32 %v240_v34, %v120_v33 }
 0x11f   :  { %v126_v37 = vmax.f32 %v121_v35, 0.0 }
 0x121   :  { %v128_v40 = vsel %vm125_vm6, %v126_v37, %v121_v35 }
 0x124   :  { %v122_v36 = vpop.f32.mrf.mxu1 }
 0x125   :  { %v123_v38 = vadd.f32 %v240_v34, %v122_v36 }
 0x127   :  { %v127_v39 = vmax.f32 %v123_v38, 0.0 }
 0x129   :  { %v129_v41 = vsel %vm125_vm6, %v127_v39, %v123_v38 }
 0x12a   :  { %v130_v42 = vpack.c.bf16 %v129_v41, %v128_v40 }
 0x12c   :  { %229 = vmatmul.msk.bf16.vlgmr.msra.gmra.mxu2 %vm138_vm7, %v130_v42 }
 0x1af   :  { %v157_v43 = vpop.f32.mrf.mxu2 }
 0x1b0   :  { %v230_v44 = vmul.f32 -1.442695, %v157_v43 }
 0x1b2   :  { %241 = vpow2.f32 %v230_v44 }
 0x1b7   :  { %v159_v45 = vpop.f32.mrf.mxu2 }
 0x1b8   :  { %v242_v46 = vpop.eup %241  ;;  %v231_v47 = vmul.f32 -1.442695, %v159_v45 }
 0x1b9   :  { %v168_v48 = vadd.f32 1.0, %v242_v46 }
 0x1ba   :  { %243 = vpow2.f32 %v231_v47 }
 0x1bb   :  { %245 = vrcp.f32 %v168_v48  ;;  %v181_v54 = vand.u32 2147483648, %v168_v48  ;;  %v179_v56 = vand.u32 2147483647, %v168_v48  ;;  %vm175_vm9 = vweird.f32 %v168_v48 }
 0x1bd   :  { %v182_v59 = vor.u32 1.1754944e-38, %v181_v54  ;;  %vm180_vm12 = vcmp.eq.f32.partialorder %v179_v56, 8.507059e+37 }
 0x1c0   :  { %v244_v49 = vpop.eup %243 }
 0x1c1   :  { %v246_v50 = vpop.eup %245  ;;  %v169_v51 = vadd.f32 1.0, %v244_v49 }
 0x1c2   :  { %v171_v52 = vmul.f32 %v246_v50, %v168_v48  ;;  %vm176_vm8 = vweird.f32 %v246_v50 }
 0x1c3   :  { %247 = vrcp.f32 %v169_v51  ;;  %vm177_vm10 = vmor %vm175_vm9, %vm176_vm8  ;;  %v196_v0 = vand.u32 2147483648, %v169_v51  ;;  %v194_v2 = vand.u32 2147483647, %v169_v51  ;;  %vm190_vm14 = vweird.f32 %v169_v51 }
 0x1c4   :  { %v172_v53 = vsub.f32 1.0, %v171_v52 }
 0x1c5   :  { %v197_v4 = vor.u32 1.1754944e-38, %v196_v0  ;;  %vm195_vm0 = vcmp.eq.f32.partialorder %v194_v2, 8.507059e+37 }
 0x1c6   :  { %v173_v55 = vmul.f32 %v246_v50, %v172_v53 }
 0x1c8   :  { %v174_v57 = vadd.f32 %v246_v50, %v173_v55 }
 0x1c9   :  { %v248_v58 = vpop.eup %247 }
 0x1ca   :  { %v178_v60 = vsel %vm177_vm10, %v246_v50, %v174_v57  ;;  %v186_v61 = vmul.f32 %v248_v58, %v169_v51  ;;  %vm191_vm13 = vweird.f32 %v248_v58 }
 0x1cb   :  { %v183_v62 = vsel %vm180_vm12, %v182_v59, %v178_v60  ;;  %vm192_vm15 = vmor %vm190_vm14, %vm191_vm13 }
 0x1cc   :  { %201 = vst.msk [vmem:[%s332_s6] sm:$0xff] %vm200_vm11, %v183_v62  ;;  %v187_v63 = vsub.f32 1.0, %v186_v61 }
 0x1ce   :  { %v188_v1 = vmul.f32 %v248_v58, %v187_v63 }
 0x1d0   :  { %v189_v3 = vadd.f32 %v248_v58, %v188_v1 }
 0x1d2   :  { %v193_v5 = vsel %vm192_vm15, %v248_v58, %v189_v3 }
 0x1d3   :  { %v198_v6 = vsel %vm195_vm0, %v197_v4, %v193_v5 }
 0x1d4   :  { %202 = vst.msk [vmem:[%s332_s6 + $0x8] sm:$0xff] %vm200_vm11, %v198_v6 }

</bundles_post_ra>
